<compile_context>
chip_gen: v5e
topology: v5e:2x2
jax: 0.10.0
libtpu: 0.0.40
codegen_flags: <defaults>
</compile_context>

<pallas_src>
import functools

import jax
import jax.numpy as jnp
from jax.experimental import pallas as pl
from jax.experimental.pallas import tpu as pltpu


def _charbonnier_partial_kernel(p_ref, t_ref, o_ref, *, eps, n_rows, tm, tn):
    """One grid step: (tm, tn) input tile -> (1, 8, tn) f32 partial sum."""
    i = pl.program_id(0)

    diff = p_ref[...].astype(jnp.float32) - t_ref[...].astype(jnp.float32)
    val = jnp.sqrt(diff * diff + jnp.float32(eps * eps))

    def _partial(x):
        # (tm, tn) -> (tm//8, 8, tn), sum over the leading axis:
        # pure VALU vreg adds, no cross-lane (XLU) movement in the kernel.
        return x.reshape(tm // 8, 8, tn).sum(axis=0)[None]

    if n_rows % tm == 0:
        # Every tile fully in-bounds: no masking anywhere.
        o_ref[...] = _partial(val)
    else:
        last = pl.num_programs(0) - 1

        @pl.when(i != last)
        def _():
            o_ref[...] = _partial(val)

        @pl.when(i == last)
        def _():
            # Rows past n_rows come from the padded edge block (garbage):
            # zero them (jnp.where also squashes any NaN/Inf garbage).
            row_ids = jax.lax.broadcasted_iota(jnp.int32, (tm, tn), 0) + i * tm
            o_ref[...] = _partial(
                jnp.where(row_ids < n_rows, val, jnp.float32(0.0)))


def charbonnier_loss(y_pred, y_true, charb_padding=0.001, *, tm=2048, tn=128):
    assert y_pred.shape == y_true.shape
    eps = float(charb_padding)
    n_valid = int(y_pred.size)

    p_flat = y_pred.reshape(-1)
    t_flat = y_true.reshape(-1)

    # Rare ragged case: pad to a multiple of the 128-lane width. Each padded
    # zero contributes exactly sqrt(0 + eps^2) = eps, corrected analytically
    # below (assumes pad value 0).
    n_pad = (-n_valid) % tn
    if n_pad:
        # TODO(synk): for huge tensors with size % 128 != 0 this pad copies the
        # inputs; could instead handle the <128-element tail in plain JAX.
        p_flat = jnp.pad(p_flat, (0, n_pad))
        t_flat = jnp.pad(t_flat, (0, n_pad))

    n_rows = (n_valid + n_pad) // tn
    # Clamp the row tile for small inputs; keep it a multiple of 8 (sublanes).
    tm_eff = min(tm, ((n_rows + 7) // 8) * 8)
    num_tiles = pl.cdiv(n_rows, tm_eff)

    p2d = p_flat.reshape(n_rows, tn)
    t2d = t_flat.reshape(n_rows, tn)

    kernel = functools.partial(
        _charbonnier_partial_kernel, eps=eps, n_rows=n_rows, tm=tm_eff, tn=tn)

    partials = pl.pallas_call(
        kernel,
        out_shape=jax.ShapeDtypeStruct((num_tiles, 8, tn), jnp.float32),
        grid_spec=pltpu.PrefetchScalarGridSpec(
            num_scalar_prefetch=0,
            grid=(num_tiles,),
            in_specs=[
                pl.BlockSpec((tm_eff, tn), lambda i: (i, 0)),
                pl.BlockSpec((tm_eff, tn), lambda i: (i, 0)),
            ],
            out_specs=pl.BlockSpec((1, 8, tn), lambda i: (i, 0, 0)),
        ),
        compiler_params=pltpu.CompilerParams(
            dimension_semantics=("parallel",)),
    )(p2d, t2d)

    # Tiny final reduction + analytic pad correction + mean in plain JAX.
    total = jnp.sum(partials, dtype=jnp.float32)
    total = total - jnp.float32(n_pad) * jnp.float32(eps)
    return total / jnp.float32(n_valid)


if __name__ == "__main__":
    key = jax.random.PRNGKey(0)
    k1, k2 = jax.random.split(key)
    # NCHW like the PyTorch module would see: batch=2, channels=4, spatial=16x16.
    x_shape = (2, 4, 16, 16)
    y_pred = jax.random.normal(k1, x_shape, dtype=jnp.float32)
    y_true = jax.random.normal(k2, x_shape, dtype=jnp.float32)

    loss = charbonnier_loss(y_pred, y_true, charb_padding=0.001)
    loss = jax.block_until_ready(loss)

    # Reference check in plain JAX.
    diff = y_pred - y_true
    ref = jnp.mean(jnp.sqrt(diff * diff + 0.001 * 0.001))
    assert jnp.allclose(loss, ref, rtol=1e-5, atol=1e-6), (loss, ref)

    print("KERNEL_OK")
</pallas_src>

<mosaic_0001>
module attributes {stable_mosaic.version = 11 : i64} {
  func.func @_charbonnier_partial_kernel(%arg0: i32, %arg1: memref<16x128xf32, #tpu.memory_space<vmem>>, %arg2: memref<16x128xf32, #tpu.memory_space<vmem>>, %arg3: memref<1x8x128xf32, #tpu.memory_space<vmem>>) attributes {dimension_semantics = [#tpu.dimension_semantics<parallel>], iteration_bounds = array<i64: 1>, scalar_prefetch = 0 : i64, scratch_operands = 0 : i64, tpu.core_type = #tpu.core_type<tc>, window_params = [{transform_indices = @transform_0, window_bounds = array<i64: 16, 128>}, {transform_indices = @transform_1, window_bounds = array<i64: 16, 128>}, {transform_indices = @transform_2, window_bounds = array<i64: 1, 8, 128>}]} {
    %c0 = arith.constant 0 : index
    %c0_0 = arith.constant 0 : index
    %0 = vector.load %arg1[%c0, %c0_0] : memref<16x128xf32, #tpu.memory_space<vmem>>, vector<16x128xf32>
    %c0_1 = arith.constant 0 : index
    %c0_2 = arith.constant 0 : index
    %1 = vector.load %arg2[%c0_1, %c0_2] : memref<16x128xf32, #tpu.memory_space<vmem>>, vector<16x128xf32>
    %2 = arith.subf %0, %1 : vector<16x128xf32>
    %3 = arith.mulf %2, %2 : vector<16x128xf32>
    %cst = arith.constant 9.99999997E-7 : f32
    %4 = vector.broadcast %cst : f32 to vector<16x128xf32>
    %5 = arith.addf %3, %4 : vector<16x128xf32>
    %6 = math.sqrt %5 : vector<16x128xf32>
    %7 = vector.shape_cast %6 : vector<16x128xf32> to vector<2x8x128xf32>
    %cst_3 = arith.constant dense<0.000000e+00> : vector<8x128xf32>
    %8 = vector.multi_reduction <add>, %7, %cst_3 [0] : vector<2x8x128xf32> to vector<8x128xf32>
    %9 = vector.shape_cast %8 : vector<8x128xf32> to vector<1x8x128xf32>
    %c0_4 = arith.constant 0 : index
    %c0_5 = arith.constant 0 : index
    %c0_6 = arith.constant 0 : index
    %10 = vector.load %arg3[%c0_4, %c0_5, %c0_6] : memref<1x8x128xf32, #tpu.memory_space<vmem>>, vector<1x8x128xf32>
    tpu.vector_store %arg3[%c0_4, %c0_5, %c0_6], %9 {strides = array<i32>} : memref<1x8x128xf32, #tpu.memory_space<vmem>>, vector<1x8x128xf32>,
    return
  }
  func.func @transform_0(%arg0: i32) -> (i32, i32) {
    %c0_i32 = arith.constant 0 : i32
    %c0_i32_0 = arith.constant 0 : i32
    return %arg0, %c0_i32 : i32, i32
  }
  func.func @transform_1(%arg0: i32) -> (i32, i32) {
    %c0_i32 = arith.constant 0 : i32
    %c0_i32_0 = arith.constant 0 : i32
    return %arg0, %c0_i32 : i32, i32
  }
  func.func @transform_2(%arg0: i32) -> (i32, i32, i32) {
    %c0_i32 = arith.constant 0 : i32
    %c0_i32_0 = arith.constant 0 : i32
    %c0_i32_1 = arith.constant 0 : i32
    return %arg0, %c0_i32, %c0_i32_0 : i32, i32, i32
  }
}

</mosaic_0001>

<bundles_post_ra>
// kernel: tpu_custom_call.1
= control target key start
LH: loop header
LB: loop body
LE: loop exit
PB: predicated region body
PF: predicated region fallthrough
CT: control target
= control target key end

     0   :  { %7 = vsyncpa [#allocation3], 0  ;;  %s214_s0 = inlined_call_operand.hbm [shape: f32[16,128], index: 0, kind: input, shape index: {}]   ;;  %s215_s1 = inlined_call_operand.hbm [shape: f32[16,128], index: 1, kind: input, shape index: {}]   ;;  %s216_s2 = inlined_call_operand.hbm [shape: f32[1,8,128], index: 2, kind: output, shape index: {}]  }
   0x1   :  { %8 = vsyncpa [#allocation6], 0 }
   0x2   :  { %9 = vsyncpa [#allocation4], 0  ;;  %s14_s11 = sshll.u32 %s214_s0, 4  ;;  %s185_s12 = smov [#allocation2]   ;;  %s15_s11 = int_to_ptr.hbm [resolvable:$true] %s14_s11 }
   0x3   :  { %s16_s13 = sshll.u32 %s185_s12, 4  ;;  %s27_s16 = sshll.u32 %s215_s1, 4  ;;  %s17_s13 = int_to_ptr.vmem [resolvable:$true] %s16_s13  ;;  %s28_s16 = int_to_ptr.hbm [resolvable:$true] %s27_s16 }
   0x4   :  { %s186_s17 = smov 128   ;;  %s187_s18 = smov 8  }
   0x5   :  { %22 = dma.hbm_to_vmem [thread:$0]  %s15_s11, 256, %s17_s13, [#allocation3], %s186_s17, %s186_s17, %s187_s18  }
   0x6   :  { %s188_s19 = smov [#allocation5]  }
   0x7   :  { %s29_s20 = sshll.u32 %s188_s19, 4  ;;  %s30_s20 = int_to_ptr.vmem [resolvable:$true] %s29_s20 }
   0x8   :  { %35 = dma.hbm_to_vmem [thread:$0]  %s28_s16, 256, %s30_s20, [#allocation6], %s186_s17, %s186_s17, %s187_s18  }
   0x9   :  { %179 = dma.done.wait [#allocation3], 256  }
   0xa   :  { %180 = vsyncadd [#allocation3], 4294967040 }
   0xb   :  { %181 = dma.done.wait [#allocation6], 256  }
   0xc   :  { %182 = vsyncadd [#allocation6], 4294967040  ;;  %v44_v0 = vld [vmem:[#allocation2] sm:$0xff]  ;;  %v45_v1 = vld [vmem:[#allocation2 + $0x8] sm:$0xff]  ;;  %s189_s0 = smov [#allocation7]   ;;  %s87_s23 = sshll.u32 %s216_s2, 4  ;;  %s88_s23 = int_to_ptr.hbm [resolvable:$true] %s87_s23 }
   0xd   :  { %v46_v2 = vld [vmem:[#allocation5] sm:$0xff]  ;;  %v47_v3 = vld [vmem:[#allocation5 + $0x8] sm:$0xff]  ;;  %s85_s1 = sshll.u32 %s189_s0, 4  ;;  %s86_s1 = int_to_ptr.vmem [resolvable:$true] %s85_s1 }
   0xe   :  { %v48_v4 = vsub.f32 %v44_v0, %v46_v2  ;;  %v49_v5 = vsub.f32 %v45_v1, %v47_v3 }
  0x10   :  { %v50_v6 = vmul.f32 %v48_v4, %v48_v4  ;;  %v51_v7 = vmul.f32 %v49_v5, %v49_v5 }
  0x12   :  { %v52_v8 = vadd.f32 1e-06, %v50_v6  ;;  %v53_v9 = vadd.f32 1e-06, %v51_v7 }
  0x14   :  { %103 = vrsqrt.f32 %v52_v8  ;;  %vm61_vm0 = vcmp.eq.f32.partialorder %v52_v8, inf  ;;  %v64_v21 = vand.u32 2147483648, %v52_v8  ;;  %vm63_vm1 = vcmp.eq.f32.partialorder %v52_v8, 0.0 }
  0x15   :  { %105 = vrsqrt.f32 %v53_v9  ;;  %vm73_vm2 = vcmp.eq.f32.partialorder %v53_v9, inf  ;;  %v76_v24 = vand.u32 2147483648, %v53_v9  ;;  %vm75_vm3 = vcmp.eq.f32.partialorder %v53_v9, 0.0 }
  0x1a   :  { %v104_v10 = vpop.eup %103 }
  0x1b   :  { %v106_v11 = vpop.eup %105  ;;  %v55_v12 = vmul.f32 %v104_v10, %v52_v8 }
  0x1c   :  { %v67_v13 = vmul.f32 %v106_v11, %v53_v9 }
  0x1d   :  { %v56_v14 = vmul.f32 %v104_v10, %v55_v12 }
  0x1e   :  { %v68_v15 = vmul.f32 %v106_v11, %v67_v13 }
  0x1f   :  { %v57_v16 = vmul.f32 0.5, %v56_v14 }
  0x20   :  { %v69_v17 = vmul.f32 0.5, %v68_v15 }
  0x21   :  { %v58_v18 = vsub.f32 1.5, %v57_v16 }
  0x22   :  { %v70_v19 = vsub.f32 1.5, %v69_v17 }
  0x23   :  { %v59_v20 = vmul.f32 %v104_v10, %v58_v18 }
  0x24   :  { %v71_v22 = vmul.f32 %v106_v11, %v70_v19 }
  0x25   :  { %v60_v23 = vmul.f32 %v59_v20, %v52_v8 }
  0x26   :  { %v72_v25 = vmul.f32 %v71_v22, %v53_v9 }
  0x27   :  { %v62_v26 = vsel %vm61_vm0, %v52_v8, %v60_v23 }
  0x28   :  { %v65_v27 = vsel %vm63_vm1, %v64_v21, %v62_v26  ;;  %v74_v28 = vsel %vm73_vm2, %v53_v9, %v72_v25 }
  0x29   :  { %v77_v29 = vsel %vm75_vm3, %v76_v24, %v74_v28 }
  0x2a   :  { %v78_v30 = vadd.f32 %v77_v29, %v65_v27 }
  0x2c   :  { %79 = vst [vmem:[#allocation7] sm:$0xff] %v78_v30 }
  0x2d   :  { %90 = dma.vmem_to_hbm [thread:$0]  %s86_s1, 128, %s88_s23, [#allocation4]  }
  0x2e   :  { %183 = dma.done.wait [#allocation4], 128  }
  0x2f   :  { %184 = vsyncadd [#allocation4], 4294967168 }
  0x30   :  { %95 = vsyncpa [#allocation3], 1 }
  0x31   :  { %96 = vsyncpa [#allocation6], 1 }
  0x32   :  { %97 = vsyncpa [#allocation4], 1 }

</bundles_post_ra>
